<compile_context>
chip_gen: v7x
topology: tpu7x:2x2x1
jax: 0.10.0
libtpu: 0.0.40
codegen_flags: <defaults>
</compile_context>

<pallas_src>
import math

import jax
import jax.numpy as jnp
from jax.experimental import pallas as pl
from jax.experimental.pallas import tpu as pltpu

LANE = 128  # every hidden/output feature dim is padded to one full lane width

# w1aux slab row layout ([input_size + 8, 128] f32):
#   rows 0 .. input_size-1 : W1^T  (padded cols 10..127 are 0)
#   row  input_size + 0    : b1
#   row  input_size + 1    : g1   (bn1 gamma)
#   row  input_size + 2    : bt1  (bn1 beta)
#   row  input_size + 3    : b2
#   row  input_size + 4    : g2   (bn2 gamma)
#   row  input_size + 5    : bt2  (bn2 beta)
#   row  input_size + 6    : b3
#   row  input_size + 7    : unused (zeros)
#
# w23 slab: [2, 128, 128] f32 — W2^T and W3^T, zero-padded.


# ----------------------------- Pallas kernel ------------------------------ #
def complexnet_kernel(x_ref, w1aux_ref, w23_ref, o_ref):
    eps = jnp.float32(1e-5)
    b = x_ref.shape[0]
    d_in = x_ref.shape[1]
    inv_b = jnp.float32(1.0 / b)

    x = x_ref[...]                                   # [B, d_in]
    w1 = w1aux_ref[0:d_in, :]                        # [d_in, 128]
    b1 = w1aux_ref[d_in + 0:d_in + 1, :]             # [1, 128]
    g1 = w1aux_ref[d_in + 1:d_in + 2, :]
    bt1 = w1aux_ref[d_in + 2:d_in + 3, :]
    b2 = w1aux_ref[d_in + 3:d_in + 4, :]
    g2 = w1aux_ref[d_in + 4:d_in + 5, :]
    bt2 = w1aux_ref[d_in + 5:d_in + 6, :]
    b3 = w1aux_ref[d_in + 6:d_in + 7, :]

    def bn_relu(h, gamma, beta):
        # BatchNorm1d (training mode), two-moment form: the sum and the
        # sum-of-squares XLU reductions have no data dependency, so they
        # overlap instead of serializing (mean -> diff -> mean(diff^2)).
        # Padded columns: h == 0 -> mu = 0, var = 0, result stays 0
        # (gamma = beta = 0 there), no NaN risk.
        s1 = jnp.sum(h, axis=0, keepdims=True)
        s2 = jnp.sum(h * h, axis=0, keepdims=True)
        mu = s1 * inv_b
        var = s2 * inv_b - mu * mu                   # biased batch variance
        hn = (h - mu) * jax.lax.rsqrt(var + eps)     # rsqrt -> EUP slot
        return jnp.maximum(hn * gamma + beta, 0.0)

    # hidden1 -> bn1 -> relu          (h1: [B, 128], real cols 0..9)
    h1 = jnp.dot(x, w1, preferred_element_type=jnp.float32) + b1
    h1 = bn_relu(h1, g1, bt1)

    # hidden2 -> bn2 -> relu          (h2: [B, 128], real cols 0..4)
    h2 = jnp.dot(h1, w23_ref[0], preferred_element_type=jnp.float32) + b2
    h2 = bn_relu(h2, g2, bt2)

    # output layer — lane-dense [B, 128] store, real result in column 0.
    o_ref[...] = jnp.dot(h2, w23_ref[1], preferred_element_type=jnp.float32) + b3


# --------------------------- one-time param pack --------------------------- #
def pack_params(params):
    """Pack the 10 unpadded parameters into 2 kernel-ready slabs (call ONCE)."""
    (w1, b1, g1, bt1, w2, b2, g2, bt2, w3, b3) = params
    d_in = w1.shape[0]

    w1aux = jnp.zeros((d_in + 8, LANE), jnp.float32)
    w1aux = w1aux.at[:d_in, :w1.shape[1]].set(w1)
    for i, row in enumerate((b1, g1, bt1, b2, g2, bt2, b3)):
        w1aux = w1aux.at[d_in + i, :row.shape[1]].set(row[0])

    w23 = jnp.zeros((2, LANE, LANE), jnp.float32)
    w23 = w23.at[0, :w2.shape[0], :w2.shape[1]].set(w2)
    w23 = w23.at[1, :w3.shape[0], :w3.shape[1]].set(w3)
    return w1aux, w23


# ------------------------------ JAX wrapper ------------------------------- #
def complexnet_forward(x, w1aux, w23):
    """x: [B, input_size] f32; w1aux/w23: packed slabs from pack_params()."""
    B, d_in = x.shape

    flops = 2 * B * (d_in * LANE + LANE * LANE + LANE * LANE)
    bytes_accessed = 4 * (B * d_in + w1aux.size + w23.size + B * LANE)

    out_padded = pl.pallas_call(
        complexnet_kernel,
        out_shape=jax.ShapeDtypeStruct((B, LANE), jnp.float32),
        # No grid: single-shot kernel, whole arrays resident in VMEM.
        in_specs=[
            pl.BlockSpec(memory_space=pltpu.MemorySpace.VMEM),  # x      [B, d_in]
            pl.BlockSpec(memory_space=pltpu.MemorySpace.VMEM),  # w1aux  [d_in+8, 128]
            pl.BlockSpec(memory_space=pltpu.MemorySpace.VMEM),  # w23    [2, 128, 128]
        ],
        out_specs=pl.BlockSpec(memory_space=pltpu.MemorySpace.VMEM),
        cost_estimate=pl.CostEstimate(
            flops=flops,
            transcendentals=2 * LANE,           # two rsqrt sweeps over 128 lanes
            bytes_accessed=bytes_accessed,
        ),
    )(x, w1aux, w23)

    # Real output lives in column 0 of the lane-dense slab.
    return out_padded[:, :1]


# --------------------------- parameter creation ---------------------------- #
def init_params(key, input_size):
    """Deterministic init mirroring the PyTorch module's __init__."""
    ks = jax.random.split(key, 6)

    def kaiming_uniform(k, fan_in, fan_out):
        # nn.init.kaiming_uniform_(..., nonlinearity='relu')
        bound = math.sqrt(6.0 / fan_in)
        # stored transposed: [in, out]
        return jax.random.uniform(k, (fan_in, fan_out), jnp.float32, -bound, bound)

    def xavier_uniform(k, fan_in, fan_out):
        bound = math.sqrt(6.0 / (fan_in + fan_out))
        return jax.random.uniform(k, (fan_in, fan_out), jnp.float32, -bound, bound)

    def linear_bias(k, fan_in, fan_out):
        bound = 1.0 / math.sqrt(fan_in)
        return jax.random.uniform(k, (1, fan_out), jnp.float32, -bound, bound)

    w1 = kaiming_uniform(ks[0], input_size, 10)
    b1 = linear_bias(ks[1], input_size, 10)
    g1 = jnp.ones((1, 10), jnp.float32)      # bn1 gamma
    bt1 = jnp.zeros((1, 10), jnp.float32)    # bn1 beta

    w2 = kaiming_uniform(ks[2], 10, 5)
    b2 = linear_bias(ks[3], 10, 5)
    g2 = jnp.ones((1, 5), jnp.float32)       # bn2 gamma
    bt2 = jnp.zeros((1, 5), jnp.float32)     # bn2 beta

    w3 = xavier_uniform(ks[4], 5, 1)
    b3 = linear_bias(ks[5], 5, 1)

    return (w1, b1, g1, bt1, w2, b2, g2, bt2, w3, b3)


# ------------------------------ pure-JAX ref ------------------------------- #
def reference_forward(x, params):
    (w1, b1, g1, bt1, w2, b2, g2, bt2, w3, b3) = params
    eps = 1e-5

    def bn_relu(h, g, bt):
        mu = jnp.mean(h, axis=0, keepdims=True)
        var = jnp.mean((h - mu) ** 2, axis=0, keepdims=True)
        return jnp.maximum((h - mu) / jnp.sqrt(var + eps) * g + bt, 0.0)

    h1 = bn_relu(x @ w1 + b1, g1, bt1)
    h2 = bn_relu(h1 @ w2 + b2, g2, bt2)
    return h2 @ w3 + b3


if __name__ == "__main__":
    key = jax.random.PRNGKey(0)
    k_x, k_p = jax.random.split(key)

    batch, input_size = 8, 16
    x = jax.random.normal(k_x, (batch, input_size), jnp.float32)
    params = init_params(k_p, input_size)

    # Pack weights / BN params ONCE (out of the per-forward path).
    w1aux, w23 = pack_params(params)
    w1aux, w23 = jax.block_until_ready((w1aux, w23))

    fwd = jax.jit(complexnet_forward)
    out = jax.block_until_ready(fwd(x, w1aux, w23))

    ref = reference_forward(x, params)
    assert out.shape == (batch, 1)
    assert jnp.allclose(out, ref, atol=1e-4, rtol=1e-4)

    print("KERNEL_OK")
</pallas_src>

<mosaic_0001>
module attributes {stable_mosaic.version = 11 : i64} {
  func.func @complexnet_kernel(%arg0: memref<8x16xf32, #tpu.memory_space<vmem>>, %arg1: memref<24x128xf32, #tpu.memory_space<vmem>>, %arg2: memref<2x128x128xf32, #tpu.memory_space<vmem>>, %arg3: memref<8x128xf32, #tpu.memory_space<vmem>>) attributes {dimension_semantics = [], scalar_prefetch = 0 : i64, scratch_operands = 0 : i64, tpu.core_type = #tpu.core_type<tc>} {
    %c0 = arith.constant 0 : index
    %c0_0 = arith.constant 0 : index
    %0 = vector.load %arg0[%c0, %c0_0] : memref<8x16xf32, #tpu.memory_space<vmem>>, vector<8x16xf32>
    %c0_1 = arith.constant 0 : index
    %c0_2 = arith.constant 0 : index
    %1 = vector.load %arg1[%c0_1, %c0_2] : memref<24x128xf32, #tpu.memory_space<vmem>>, vector<16x128xf32>
    %c16 = arith.constant 16 : index
    %c0_3 = arith.constant 0 : index
    %2 = vector.load %arg1[%c16, %c0_3] : memref<24x128xf32, #tpu.memory_space<vmem>>, vector<1x128xf32>
    %c17 = arith.constant 17 : index
    %c0_4 = arith.constant 0 : index
    %3 = vector.load %arg1[%c17, %c0_4] : memref<24x128xf32, #tpu.memory_space<vmem>>, vector<1x128xf32>
    %c18 = arith.constant 18 : index
    %c0_5 = arith.constant 0 : index
    %4 = vector.load %arg1[%c18, %c0_5] : memref<24x128xf32, #tpu.memory_space<vmem>>, vector<1x128xf32>
    %c19 = arith.constant 19 : index
    %c0_6 = arith.constant 0 : index
    %5 = vector.load %arg1[%c19, %c0_6] : memref<24x128xf32, #tpu.memory_space<vmem>>, vector<1x128xf32>
    %c20 = arith.constant 20 : index
    %c0_7 = arith.constant 0 : index
    %6 = vector.load %arg1[%c20, %c0_7] : memref<24x128xf32, #tpu.memory_space<vmem>>, vector<1x128xf32>
    %c21 = arith.constant 21 : index
    %c0_8 = arith.constant 0 : index
    %7 = vector.load %arg1[%c21, %c0_8] : memref<24x128xf32, #tpu.memory_space<vmem>>, vector<1x128xf32>
    %c22 = arith.constant 22 : index
    %c0_9 = arith.constant 0 : index
    %8 = vector.load %arg1[%c22, %c0_9] : memref<24x128xf32, #tpu.memory_space<vmem>>, vector<1x128xf32>
    %cst = arith.constant dense<0.000000e+00> : vector<8x128xf32>
    %9 = tpu.matmul %0, %1, %cst {dimension_numbers = #tpu.dot_dimension_numbers<[1], [0], [0], [1], [0, 0, 1, 1], [], []>} : vector<8x16xf32>, vector<16x128xf32>, vector<8x128xf32> -> vector<8x128xf32>
    %10 = vector.broadcast %2 : vector<1x128xf32> to vector<8x128xf32>
    %11 = arith.addf %9, %10 : vector<8x128xf32>
    %cst_10 = arith.constant dense<0.000000e+00> : vector<128xf32>
    %12 = vector.multi_reduction <add>, %11, %cst_10 [0] : vector<8x128xf32> to vector<128xf32>
    %13 = vector.shape_cast %12 : vector<128xf32> to vector<1x128xf32>
    %14 = arith.mulf %11, %11 : vector<8x128xf32>
    %cst_11 = arith.constant dense<0.000000e+00> : vector<128xf32>
    %15 = vector.multi_reduction <add>, %14, %cst_11 [0] : vector<8x128xf32> to vector<128xf32>
    %16 = vector.shape_cast %15 : vector<128xf32> to vector<1x128xf32>
    %cst_12 = arith.constant 1.250000e-01 : f32
    %17 = vector.broadcast %cst_12 : f32 to vector<1x128xf32>
    %18 = arith.mulf %13, %17 : vector<1x128xf32>
    %cst_13 = arith.constant 1.250000e-01 : f32
    %19 = vector.broadcast %cst_13 : f32 to vector<1x128xf32>
    %20 = arith.mulf %16, %19 : vector<1x128xf32>
    %21 = arith.mulf %18, %18 : vector<1x128xf32>
    %22 = arith.subf %20, %21 : vector<1x128xf32>
    %23 = vector.broadcast %18 : vector<1x128xf32> to vector<8x128xf32>
    %24 = arith.subf %11, %23 : vector<8x128xf32>
    %cst_14 = arith.constant 9.99999974E-6 : f32
    %25 = vector.broadcast %cst_14 : f32 to vector<1x128xf32>
    %26 = arith.addf %22, %25 : vector<1x128xf32>
    %27 = math.rsqrt %26 : vector<1x128xf32>
    %28 = vector.broadcast %27 : vector<1x128xf32> to vector<8x128xf32>
    %29 = arith.mulf %24, %28 : vector<8x128xf32>
    %30 = vector.broadcast %3 : vector<1x128xf32> to vector<8x128xf32>
    %31 = arith.mulf %29, %30 : vector<8x128xf32>
    %32 = vector.broadcast %4 : vector<1x128xf32> to vector<8x128xf32>
    %33 = arith.addf %31, %32 : vector<8x128xf32>
    %cst_15 = arith.constant 0.000000e+00 : f32
    %34 = vector.broadcast %cst_15 : f32 to vector<8x128xf32>
    %35 = arith.maximumf %33, %34 : vector<8x128xf32>
    %c0_16 = arith.constant 0 : index
    %c0_17 = arith.constant 0 : index
    %c0_18 = arith.constant 0 : index
    %36 = vector.load %arg2[%c0_16, %c0_17, %c0_18] : memref<2x128x128xf32, #tpu.memory_space<vmem>>, vector<1x128x128xf32>
    %37 = vector.shape_cast %36 : vector<1x128x128xf32> to vector<128x128xf32>
    %cst_19 = arith.constant dense<0.000000e+00> : vector<8x128xf32>
    %38 = tpu.matmul %35, %37, %cst_19 {dimension_numbers = #tpu.dot_dimension_numbers<[1], [0], [0], [1], [0, 0, 1, 1], [], []>} : vector<8x128xf32>, vector<128x128xf32>, vector<8x128xf32> -> vector<8x128xf32>
    %39 = vector.broadcast %5 : vector<1x128xf32> to vector<8x128xf32>
    %40 = arith.addf %38, %39 : vector<8x128xf32>
    %cst_20 = arith.constant dense<0.000000e+00> : vector<128xf32>
    %41 = vector.multi_reduction <add>, %40, %cst_20 [0] : vector<8x128xf32> to vector<128xf32>
    %42 = vector.shape_cast %41 : vector<128xf32> to vector<1x128xf32>
    %43 = arith.mulf %40, %40 : vector<8x128xf32>
    %cst_21 = arith.constant dense<0.000000e+00> : vector<128xf32>
    %44 = vector.multi_reduction <add>, %43, %cst_21 [0] : vector<8x128xf32> to vector<128xf32>
    %45 = vector.shape_cast %44 : vector<128xf32> to vector<1x128xf32>
    %cst_22 = arith.constant 1.250000e-01 : f32
    %46 = vector.broadcast %cst_22 : f32 to vector<1x128xf32>
    %47 = arith.mulf %42, %46 : vector<1x128xf32>
    %cst_23 = arith.constant 1.250000e-01 : f32
    %48 = vector.broadcast %cst_23 : f32 to vector<1x128xf32>
    %49 = arith.mulf %45, %48 : vector<1x128xf32>
    %50 = arith.mulf %47, %47 : vector<1x128xf32>
    %51 = arith.subf %49, %50 : vector<1x128xf32>
    %52 = vector.broadcast %47 : vector<1x128xf32> to vector<8x128xf32>
    %53 = arith.subf %40, %52 : vector<8x128xf32>
    %cst_24 = arith.constant 9.99999974E-6 : f32
    %54 = vector.broadcast %cst_24 : f32 to vector<1x128xf32>
    %55 = arith.addf %51, %54 : vector<1x128xf32>
    %56 = math.rsqrt %55 : vector<1x128xf32>
    %57 = vector.broadcast %56 : vector<1x128xf32> to vector<8x128xf32>
    %58 = arith.mulf %53, %57 : vector<8x128xf32>
    %59 = vector.broadcast %6 : vector<1x128xf32> to vector<8x128xf32>
    %60 = arith.mulf %58, %59 : vector<8x128xf32>
    %61 = vector.broadcast %7 : vector<1x128xf32> to vector<8x128xf32>
    %62 = arith.addf %60, %61 : vector<8x128xf32>
    %cst_25 = arith.constant 0.000000e+00 : f32
    %63 = vector.broadcast %cst_25 : f32 to vector<8x128xf32>
    %64 = arith.maximumf %62, %63 : vector<8x128xf32>
    %c1 = arith.constant 1 : index
    %c0_26 = arith.constant 0 : index
    %c0_27 = arith.constant 0 : index
    %65 = vector.load %arg2[%c1, %c0_26, %c0_27] : memref<2x128x128xf32, #tpu.memory_space<vmem>>, vector<1x128x128xf32>
    %66 = vector.shape_cast %65 : vector<1x128x128xf32> to vector<128x128xf32>
    %cst_28 = arith.constant dense<0.000000e+00> : vector<8x128xf32>
    %67 = tpu.matmul %64, %66, %cst_28 {dimension_numbers = #tpu.dot_dimension_numbers<[1], [0], [0], [1], [0, 0, 1, 1], [], []>} : vector<8x128xf32>, vector<128x128xf32>, vector<8x128xf32> -> vector<8x128xf32>
    %68 = vector.broadcast %8 : vector<1x128xf32> to vector<8x128xf32>
    %69 = arith.addf %67, %68 : vector<8x128xf32>
    %c0_29 = arith.constant 0 : index
    %c0_30 = arith.constant 0 : index
    %70 = vector.load %arg3[%c0_29, %c0_30] : memref<8x128xf32, #tpu.memory_space<vmem>>, vector<8x128xf32>
    tpu.vector_store %arg3[%c0_29, %c0_30], %69 {strides = array<i32>} : memref<8x128xf32, #tpu.memory_space<vmem>>, vector<8x128xf32>,
    return
  }
}

</mosaic_0001>

<bundles_post_ra>
// kernel: complexnet_forward.1
= control target key start
LH: loop header
LB: loop body
LE: loop exit
PB: predicated region body
PF: predicated region fallthrough
CT: control target
= control target key end

     0   :  { %8 = vsyncpa [#allocation3], 0  ;;  %s738_s0 = inlined_call_operand.hbm [shape: f32[8,16], index: 0, kind: input, shape index: {}]   ;;  %s739_s1 = inlined_call_operand.hbm [shape: f32[24,128], index: 1, kind: input, shape index: {}]   ;;  %s740_s2 = inlined_call_operand.hbm [shape: f32[2,128,128], index: 2, kind: input, shape index: {}]   ;;  %s741_s3 = inlined_call_operand.vmem [shape: f32[8,128], index: 3, kind: output, shape index: {}]  }
   0x1   :  { %9 = vsyncpa [#allocation5], 0  ;;  %s648_s12 = smov [#allocation4]   ;;  %s578_s16 = scalar_lea.hbm %s739_s1, 384 }
   0x2   :  { %s25_s13 = sshll.u32 %s648_s12, 4  ;;  %p579_p0 = scmp.ne.s32.totalorder %s739_s1, %s578_s16  ;;  %s26_s13 = int_to_ptr.vmem [resolvable:$true] %s25_s13 }
   0x3   :  { %p582_p1 = scmp.lt.u32.totalorder %s578_s16, %s739_s1 }
   0x5   :  { %p584_p2 = pnand %p582_p1, %p579_p0 }
   0x7   :  { %587 = shalt.err (!%p584_p2)
}
   0x8   :  { %s588_s21 = scalar_lea.vmem %s26_s13, 384  ;;  %p593_p4 = scmp.lt.s32.totalorder %s26_s13, %s26_s13 }
   0x9   :  { %p589_p3 = scmp.ne.s32.totalorder %s26_s13, %s588_s21  ;;  %p594_p5 = scmp.lt.s32.totalorder %s588_s21, %s588_s21 }
   0xb   :  { %p595_p6 = por %p594_p5, %p593_p4 }
   0xd   :  { %p596_p7 = pnand %p595_p6, %p589_p3 }
   0xf   :  { %599 = shalt.err (!%p596_p7)
}
  0x10   :  { %s649_s22 = smov 128   ;;  %s650_s23 = smov 8  }
  0x11   :  { %31 = dma.hbm_to_vmem [thread:$0]  %s739_s1, 384, %s26_s13, [#allocation5], %s649_s22, %s649_s22, %s650_s23  }
  0x12   :  { %s651_s26 = smov [#allocation2]   ;;  %s652_s28 = smov [#allocation6]  }
  0x13   :  { %s16_s27 = sshll.u32 %s651_s26, 4  ;;  %s37_s29 = sshll.u32 %s652_s28, 4  ;;  %s17_s27 = int_to_ptr.vmem [resolvable:$true] %s16_s27  ;;  %s38_s29 = int_to_ptr.vmem [resolvable:$true] %s37_s29 }
  0x14   :  { %s600_s5 = scalar_lea.hbm %s738_s0, 128 }
  0x15   :  { %p601_p8 = scmp.ne.s32.totalorder %s738_s0, %s600_s5  ;;  %p604_p9 = scmp.lt.u32.totalorder %s600_s5, %s738_s0 }
  0x17   :  { %p606_p10 = pnand %p604_p9, %p601_p8 }
  0x19   :  { %609 = shalt.err (!%p606_p10)
}
  0x1a   :  { %s610_s1 = scalar_lea.vmem %s17_s27, 128  ;;  %p615_p12 = scmp.lt.s32.totalorder %s17_s27, %s17_s27 }
  0x1b   :  { %p611_p11 = scmp.ne.s32.totalorder %s17_s27, %s610_s1  ;;  %p616_p13 = scmp.lt.s32.totalorder %s610_s1, %s610_s1 }
  0x1d   :  { %p617_p0 = por %p616_p13, %p615_p12 }
  0x1f   :  { %p618_p1 = pnand %p617_p0, %p611_p11 }
  0x21   :  { %621 = shalt.err (!%p618_p1)
}
  0x22   :  { %19 = dma.hbm_to_vmem [thread:$0]  %s738_s0, 128, %s17_s27, [#allocation3]  }
  0x23   :  { %s622_s14 = scalar_lea.hbm %s740_s2, 4096 }
  0x24   :  { %p623_p2 = scmp.ne.s32.totalorder %s740_s2, %s622_s14  ;;  %p626_p3 = scmp.lt.u32.totalorder %s622_s14, %s740_s2 }
  0x26   :  { %p628_p4 = pnand %p626_p3, %p623_p2 }
  0x28   :  { %631 = shalt.err (!%p628_p4)
}
  0x29   :  { %s632_s19 = scalar_lea.vmem %s38_s29, 4096  ;;  %p637_p6 = scmp.lt.s32.totalorder %s38_s29, %s38_s29 }
  0x2a   :  { %p633_p5 = scmp.ne.s32.totalorder %s38_s29, %s632_s19  ;;  %p638_p7 = scmp.lt.s32.totalorder %s632_s19, %s632_s19 }
  0x2c   :  { %p639_p8 = por %p638_p7, %p637_p6 }
  0x2e   :  { %p640_p9 = pnand %p639_p8, %p633_p5 }
  0x30   :  { %643 = shalt.err (!%p640_p9)
}
  0x31   :  { %43 = dma.hbm_to_vmem [thread:$0]  %s740_s2, 4096, %s38_s29, [#allocation5], %s649_s22, %s649_s22, %s650_s23  }
  0x32   :  { %644 = dma.done.wait [#allocation3], 128  }
  0x33   :  { %645 = vsyncadd [#allocation3], 4294967168 }
  0x34   :  { %646 = dma.done.wait [#allocation5], 4480  }
  0x35   :  { %647 = vsyncadd [#allocation5], 4294962816  ;;  %v653_v0 = vmov 0.0|0.0   ;;  %vm654_vm0 = vmmov 0   ;;  %v655_v1 = vmov 0.0   ;;  %v54_v2 = vld [vmem:[#allocation4] sm:$0xff] }
  0x36   :  { %515 = vmatprep.subr.bf16.mxu0 %v653_v0  ;;  %442 = vmatprep.mubr.msk.f32.mxu0 %vm654_vm0, %v655_v1  ;;  %v55_v3 = vld [vmem:[#allocation4 + $0x8] sm:$0xff]  ;;  %v53_v5 = vld [vmem:[#allocation2] sm:$0xff]  ;;  %vm67_vm1 = vcmask 130048   ;;  %v174_v7 = vld [vmem:[#allocation6 + $0x8] sm:$0xff] }
  0x37   :  { %518 = vmatprep.subr.bf16.mxu1 %v653_v0  ;;  %477 = vmatprep.mubr.msk.f32.mxu1 %vm654_vm0, %v655_v1  ;;  %v516_v4 = vpack.c.bf16 %v55_v3, %v54_v2  ;;  %v173_v6 = vld [vmem:[#allocation6] sm:$0xff]  ;;  %v175_v9 = vld [vmem:[#allocation6 + $0x10] sm:$0xff]  ;;  %v176_v10 = vld [vmem:[#allocation6 + $0x18] sm:$0xff] }
  0x38   :  { %v519_v8 = vpack.c.bf16 %v174_v7, %v173_v6  ;;  %v522_v11 = vpack.c.bf16 %v176_v10, %v175_v9  ;;  %v177_v12 = vld [vmem:[#allocation6 + $0x20] sm:$0xff]  ;;  %v178_v13 = vld [vmem:[#allocation6 + $0x28] sm:$0xff]  ;;  %v179_v15 = vld [vmem:[#allocation6 + $0x30] sm:$0xff] }
  0x39   :  { %517 = vmatpush3.bf16.msra.mxu0 %v516_v4  ;;  %v525_v14 = vpack.c.bf16 %v178_v13, %v177_v12  ;;  %v180_v16 = vld [vmem:[#allocation6 + $0x38] sm:$0xff]  ;;  %v181_v18 = vld [vmem:[#allocation6 + $0x40] sm:$0xff]  ;;  %v182_v19 = vld [vmem:[#allocation6 + $0x48] sm:$0xff] }
  0x3a   :  { %542 = vmatprep.subr.bf16.mxu0 %v653_v0  ;;  %520 = vmatpush3.bf16.msra.mxu1 %v519_v8  ;;  %v528_v17 = vpack.c.bf16 %v180_v16, %v179_v15  ;;  %v531_v20 = vpack.c.bf16 %v182_v19, %v181_v18  ;;  %v183_v21 = vld [vmem:[#allocation6 + $0x50] sm:$0xff]  ;;  %v184_v22 = vld [vmem:[#allocation6 + $0x58] sm:$0xff]  ;;  %v185_v24 = vld [vmem:[#allocation6 + $0x60] sm:$0xff] }
  0x3b   :  { %521 = vmatprep.subr.bf16.mxu1 %v653_v0  ;;  %v534_v23 = vpack.c.bf16 %v184_v22, %v183_v21  ;;  %v186_v25 = vld [vmem:[#allocation6 + $0x68] sm:$0xff]  ;;  %v187_v27 = vld [vmem:[#allocation6 + $0x70] sm:$0xff]  ;;  %v188_v28 = vld [vmem:[#allocation6 + $0x78] sm:$0xff] }
  0x3c   :  { %443 = vmatmul.mubr.msk.f32.vlgmr.msra.gmra.mrb[0].mxu0 %vm67_vm1, %v53_v5  ;;  %v537_v26 = vpack.c.bf16 %v186_v25, %v185_v24  ;;  %v540_v29 = vpack.c.bf16 %v188_v28, %v187_v27  ;;  %v393_v30 = vld [vmem:[#allocation4 + $0x10] ss:$0 sm:$0xff]  ;;  %v395_v54 = vld [vmem:[#allocation4 + $0x11] ss:$0 sm:$0xff]  ;;  %v396_v56 = vld [vmem:[#allocation4 + $0x12] ss:$0 sm:$0xff] }
  0x3d   :  { %512 = vmatprep.mubr.msk.f32.mxu0 %vm654_vm0, %v655_v1  ;;  %v296_v60 = vld [vmem:[#allocation6 + $0x80] sm:$0xff]  ;;  %v297_v61 = vld [vmem:[#allocation6 + $0x88] sm:$0xff]  ;;  %v298_v63 = vld [vmem:[#allocation6 + $0x90] sm:$0xff] }
  0x3e   :  { %523 = vmatpush3.bf16.msra.mxu1 %v522_v11  ;;  %v543_v62 = vpack.c.bf16 %v297_v61, %v296_v60  ;;  %v299_v1 = vld [vmem:[#allocation6 + $0x98] sm:$0xff]  ;;  %v300_v3 = vld [vmem:[#allocation6 + $0xa0] sm:$0xff]  ;;  %v301_v4 = vld [vmem:[#allocation6 + $0xa8] sm:$0xff] }
  0x3f   :  { %524 = vmatprep.subr.bf16.mxu1 %v653_v0  ;;  %v546_v2 = vpack.c.bf16 %v299_v1, %v298_v63  ;;  %v549_v5 = vpack.c.bf16 %v301_v4, %v300_v3  ;;  %v302_v6 = vld [vmem:[#allocation6 + $0xb0] sm:$0xff]  ;;  %v303_v7 = vld [vmem:[#allocation6 + $0xb8] sm:$0xff]  ;;  %v304_v9 = vld [vmem:[#allocation6 + $0xc0] sm:$0xff] }
  0x40   :  { %544 = vmatpush3.bf16.msra.mxu0 %v543_v62  ;;  %v552_v8 = vpack.c.bf16 %v303_v7, %v302_v6  ;;  %v305_v10 = vld [vmem:[#allocation6 + $0xc8] sm:$0xff]  ;;  %v306_v12 = vld [vmem:[#allocation6 + $0xd0] sm:$0xff]  ;;  %v307_v13 = vld [vmem:[#allocation6 + $0xd8] sm:$0xff] }
  0x41   :  { %545 = vmatprep.subr.bf16.mxu0 %v653_v0  ;;  %v555_v11 = vpack.c.bf16 %v305_v10, %v304_v9  ;;  %v308_v15 = vld [vmem:[#allocation6 + $0xe0] sm:$0xff]  ;;  %v309_v16 = vld [vmem:[#allocation6 + $0xe8] sm:$0xff]  ;;  %v310_v18 = vld [vmem:[#allocation6 + $0xf0] sm:$0xff] }
  0x42   :  { %526 = vmatpush3.bf16.msra.mxu1 %v525_v14  ;;  %v558_v14 = vpack.c.bf16 %v307_v13, %v306_v12  ;;  %v311_v19 = vld [vmem:[#allocation6 + $0xf8] sm:$0xff] }
  0x43   :  { %527 = vmatprep.subr.bf16.mxu1 %v653_v0  ;;  %v397_v21 = vld [vmem:[#allocation4 + $0x13] ss:$0 sm:$0xff] }
  0x44   :  { %547 = vmatpush3.bf16.msra.mxu0 %v546_v2 }
  0x45   :  { %548 = vmatprep.subr.bf16.mxu0 %v653_v0 }
  0x46   :  { %529 = vmatpush3.bf16.msra.mxu1 %v528_v17  ;;  %v561_v17 = vpack.c.bf16 %v309_v16, %v308_v15 }
  0x47   :  { %530 = vmatprep.subr.bf16.mxu1 %v653_v0 }
  0x48   :  { %550 = vmatpush3.bf16.msra.mxu0 %v549_v5 }
  0x49   :  { %551 = vmatprep.subr.bf16.mxu0 %v653_v0 }
  0x4a   :  { %532 = vmatpush3.bf16.msra.mxu1 %v531_v20  ;;  %v564_v20 = vpack.c.bf16 %v311_v19, %v310_v18 }
  0x4b   :  { %533 = vmatprep.subr.bf16.mxu1 %v653_v0 }
  0x4c   :  { %553 = vmatpush3.bf16.msra.mxu0 %v552_v8 }
  0x4d   :  { %554 = vmatprep.subr.bf16.mxu0 %v653_v0 }
  0x4e   :  { %535 = vmatpush3.bf16.msra.mxu1 %v534_v23 }
  0x4f   :  { %536 = vmatprep.subr.bf16.mxu1 %v653_v0 }
  0x50   :  { %556 = vmatpush3.bf16.msra.mxu0 %v555_v11 }
  0x51   :  { %557 = vmatprep.subr.bf16.mxu0 %v653_v0 }
  0x52   :  { %538 = vmatpush3.bf16.msra.mxu1 %v537_v26 }
  0x53   :  { %539 = vmatprep.subr.bf16.mxu1 %v653_v0 }
  0x54   :  { %559 = vmatpush3.bf16.msra.mxu0 %v558_v14 }
  0x55   :  { %560 = vmatprep.subr.bf16.mxu0 %v653_v0 }
  0x56   :  { %541 = vmatpush3.bf16.msra.mxu1 %v540_v29 }
  0x58   :  { %562 = vmatpush3.bf16.msra.mxu0 %v561_v17 }
  0x59   :  { %563 = vmatprep.subr.bf16.mxu0 %v653_v0 }
  0x5c   :  { %565 = vmatpush3.bf16.msra.mxu0 %v564_v20 }
 0x10f   :  { %v137_v31 = vpop.f32.mrb[0].mxu0 }
 0x110   :  { %v138_v32 = vadd.f32 %v393_v30, %v137_v31  ;;  %v444_v33 = vpop.f32.mrb[1].mxu0 }
 0x112   :  { %v141_v34 = vrot.slane %v138_v32, 4  ;;  %v147_v35 = vmul.f32 %v138_v32, %v138_v32 }
 0x114   :  { %v142_v36 = vadd.f32 %v141_v34, %v138_v32  ;;  %v148_v37 = vrot.slane %v147_v35, 4 }
 0x116   :  { %v143_v38 = vrot.slane %v142_v36, 2  ;;  %v149_v39 = vadd.f32 %v148_v37, %v147_v35 }
 0x118   :  { %v144_v40 = vadd.f32 %v143_v38, %v142_v36  ;;  %v150_v41 = vrot.slane %v149_v39, 2 }
 0x11a   :  { %v145_v42 = vrot.slane %v144_v40, 1  ;;  %v151_v43 = vadd.f32 %v150_v41, %v149_v39 }
 0x11c   :  { %v146_v44 = vadd.f32 %v145_v42, %v144_v40  ;;  %v152_v45 = vrot.slane %v151_v43, 1 }
 0x11e   :  { %v153_v46 = vadd.f32 %v152_v45, %v151_v43  ;;  %v154_v47 = vmul.f32 0.125, %v146_v44  ;;  %v398_v44 = vld [vmem:[#allocation4 + $0x14] ss:$0 sm:$0xff] }
 0x120   :  { %v155_v48 = vmul.f32 0.125, %v153_v46  ;;  %v156_v49 = vmul.f32 %v154_v47, %v154_v47  ;;  %v158_v52 = vsub.f32 %v138_v32, %v154_v47  ;;  %v399_v46 = vld [vmem:[#allocation4 + $0x15] ss:$0 sm:$0xff] }
 0x122   :  { %v157_v50 = vsub.f32 %v155_v48, %v156_v49 }
 0x124   :  { %v159_v51 = vadd.f32 1e-05, %v157_v50  ;;  %v400_v50 = vld [vmem:[#allocation4 + $0x16] ss:$0 sm:$0xff] }
 0x126   :  { %574 = vrsqrt.f32 %v159_v51 }
 0x130   :  { %v575_v53 = vpop.eup %574 }
 0x131   :  { %v161_v55 = vmul.f32 %v575_v53, %v158_v52 }
 0x133   :  { %v166_v57 = vmul.f32 %v395_v54, %v161_v55 }
 0x135   :  { %v171_v58 = vadd.f32 %v396_v56, %v166_v57 }
 0x137   :  { %v172_v59 = vmax.f32 %v171_v58, 0.0 }
 0x139   :  { %478 = vmatmul.mubr.f32.vlgmr.msra.gmra.mrb[0].mxu1 %v172_v59 }
 0x20c   :  { %v259_v22 = vpop.f32.mrb[0].mxu1 }
 0x20d   :  { %v260_v23 = vadd.f32 %v397_v21, %v259_v22  ;;  %v479_v24 = vpop.f32.mrb[1].mxu1 }
 0x20f   :  { %v263_v25 = vrot.slane %v260_v23, 4  ;;  %v269_v26 = vmul.f32 %v260_v23, %v260_v23 }
 0x211   :  { %v264_v27 = vadd.f32 %v263_v25, %v260_v23  ;;  %v270_v28 = vrot.slane %v269_v26, 4 }
 0x213   :  { %v265_v29 = vrot.slane %v264_v27, 2  ;;  %v271_v30 = vadd.f32 %v270_v28, %v269_v26 }
 0x215   :  { %v266_v31 = vadd.f32 %v265_v29, %v264_v27  ;;  %v272_v32 = vrot.slane %v271_v30, 2 }
 0x217   :  { %v267_v33 = vrot.slane %v266_v31, 1  ;;  %v273_v34 = vadd.f32 %v272_v32, %v271_v30 }
 0x219   :  { %v268_v35 = vadd.f32 %v267_v33, %v266_v31  ;;  %v274_v36 = vrot.slane %v273_v34, 1 }
 0x21b   :  { %v275_v37 = vadd.f32 %v274_v36, %v273_v34  ;;  %v276_v38 = vmul.f32 0.125, %v268_v35 }
 0x21d   :  { %v277_v0 = vmul.f32 0.125, %v275_v37  ;;  %v278_v39 = vmul.f32 %v276_v38, %v276_v38  ;;  %v280_v42 = vsub.f32 %v260_v23, %v276_v38 }
 0x21f   :  { %v279_v40 = vsub.f32 %v277_v0, %v278_v39 }
 0x221   :  { %v281_v41 = vadd.f32 1e-05, %v279_v40 }
 0x223   :  { %576 = vrsqrt.f32 %v281_v41 }
 0x22d   :  { %v577_v43 = vpop.eup %576 }
 0x22e   :  { %v283_v45 = vmul.f32 %v577_v43, %v280_v42 }
 0x230   :  { %v288_v47 = vmul.f32 %v398_v44, %v283_v45 }
 0x232   :  { %v293_v48 = vadd.f32 %v399_v46, %v288_v47 }
 0x234   :  { %v294_v49 = vmax.f32 %v293_v48, 0.0 }
 0x236   :  { %513 = vmatmul.mubr.f32.vlgmr.msra.gmra.mrb[2].mxu0 %v294_v49 }
 0x309   :  { %v382_v51 = vpop.f32.mrb[2].mxu0 }
 0x30a   :  { %v383_v52 = vadd.f32 %v400_v50, %v382_v51  ;;  %v514_v53 = vpop.f32.mrb[3].mxu0 }
 0x30c   :  { %386 = vst [vmem:[%s741_s3] sm:$0xff] %v383_v52 }
 0x30d   :  { %391 = vsyncpa [#allocation3], 1 }
 0x30e   :  { %392 = vsyncpa [#allocation5], 1 }

</bundles_post_ra>
